<compile_context>
chip_gen: v7x
topology: tpu7x:2x2x1
jax: 0.10.0
libtpu: 0.0.40
codegen_flags: <defaults>
</compile_context>

<pallas_src>
from functools import partial

import jax
import jax.numpy as jnp
from jax.experimental import pallas as pl
from jax.experimental.pallas import tpu as pltpu

LANES = 128                    # lane width of the flattened element axis
SUBLANES = 8                   # vreg sublane count; one row-group = (8, 128)
MAX_ROWS_PER_STEP = 4096       # rows of 128 lanes per grid step (f32-friendly)
VMEM_STREAM_BUDGET = 32 << 20  # budget for the double-buffered input streams
VMEM_LIMIT_BYTES = 48 << 20    # scoped VMEM limit; < 64 MiB so it is v7x-safe


def _num_tensorcores() -> int:
    """Best-effort TensorCores-per-device (2 on megacore v4/v5p and on v7x)."""
    try:
        kind = jax.devices()[0].device_kind.lower()
    except Exception:
        return 1
    if "lite" in kind or "v5e" in kind or "v6e" in kind:
        return 1
    for tag in ("v7", "7x", "v5p", "v4", "v5"):
        if tag in kind:
            return 2
    return 1


def _make_kernel(groups_per_core: int, g_tile: int, steps: int):
    """Streaming nansum reduction kernel with static group counts baked in."""
    mask_tail = (groups_per_core % g_tile) != 0
    last = steps - 1

    def accumulate(obs_ref, mod_ref, out_ref, j, masked):
        obs = obs_ref[...].astype(jnp.float32)           # (g_tile, 8, 128)
        mod = mod_ref[...].astype(jnp.float32)           # (Q, g_tile, 8, 128)
        diff = obs[jnp.newaxis] - mod                    # (Q, g_tile, 8, 128)

        # nansum semantics: drop NaN residuals (NaN in either input propagates).
        keep = jnp.logical_not(jnp.isnan(diff))
        if masked:
            # Final partial step only: mask row-groups past the real data (the
            # block window reads past the array; garbage groups are zeroed).
            gid = jax.lax.broadcasted_iota(jnp.int32, diff.shape, 1)
            keep = jnp.logical_and(keep, gid < (groups_per_core - j * g_tile))
        diff = jnp.where(keep, diff, 0.0)

        # Deferred reduction: vreg-aligned (Q, 8, 128) partials; pure VALU adds.
        out_ref[...] += jnp.sum(diff, axis=1)

    def kernel(obs_ref, mod_ref, out_ref):
        j = pl.program_id(1)  # reduction axis over row-group tiles

        @pl.when(j == 0)
        def _init():
            out_ref[...] = jnp.zeros_like(out_ref)

        if not mask_tail:
            accumulate(obs_ref, mod_ref, out_ref, j, masked=False)
        else:
            @pl.when(j != last)
            def _hot():
                accumulate(obs_ref, mod_ref, out_ref, j, masked=False)

            @pl.when(j == last)
            def _tail():
                accumulate(obs_ref, mod_ref, out_ref, j, masked=True)

    return kernel


@partial(jax.jit, static_argnames=("quantiles", "max_rows_per_step", "core_split"))
def sum_pinball_loss(observed, modeled, quantiles=(0.1, 0.5, 0.9),
                     max_rows_per_step=MAX_ROWS_PER_STEP, core_split=None):
    """JAX/Pallas equivalent of SumPinballLoss.forward(observed, modeled)."""
    quantiles = tuple(float(q) for q in quantiles)
    Q = len(quantiles)
    if modeled.shape[-1] != Q:
        raise ValueError("last axis of `modeled` must index the quantiles")

    C = int(core_split) if core_split is not None else _num_tensorcores()
    C = max(C, 1)

    obs = jnp.squeeze(observed)                          # mimic torch .squeeze()
    if not jnp.issubdtype(obs.dtype, jnp.floating):
        obs = obs.astype(jnp.float32)
    mod = modeled
    if not jnp.issubdtype(mod.dtype, jnp.floating):
        mod = mod.astype(jnp.float32)

    n = obs.size
    if mod.size != n * Q:
        raise ValueError("observed and modeled[..., i] must match in size")

    obs_flat = obs.reshape(-1)                           # (N,)   zero-copy
    mod2 = mod.reshape(n, Q)                             # (N, Q) zero-copy

    # Pad (with zeros -> zero contribution to every nansum) so the element axis
    # splits exactly into C * groups * (8, 128). Pad BEFORE the transpose so XLA
    # can fuse pad + transpose + reshape into one relayout copy.
    chunk = C * SUBLANES * LANES
    n_pad = pl.cdiv(n, chunk) * chunk
    pad = n_pad - n
    if pad:
        obs_flat = jnp.pad(obs_flat, (0, pad))
        mod2 = jnp.pad(mod2, ((0, pad), (0, 0)))

    # Quantile-major relayout: the one remaining extra HBM read+write of modeled.
    # TODO(synk): emit `modeled` quantile-major upstream (or cache this copy when
    # the loss is evaluated more than once per `modeled`) to eliminate this pass.
    mod_qm = jnp.transpose(mod2, (1, 0))                 # (Q, n_pad)

    groups = n_pad // chunk                              # row-groups per core
    obs4 = obs_flat.reshape(C, groups, SUBLANES, LANES)          # (C, G, 8, 128)
    mod5 = mod_qm.reshape(Q, C, groups, SUBLANES, LANES)         # (Q, C, G, 8, 128)

    # Q-aware tile sizing against the double-buffered VMEM stream budget.
    bytes_per_group = SUBLANES * LANES * (
        Q * jnp.dtype(mod5.dtype).itemsize + jnp.dtype(obs4.dtype).itemsize)
    g_cap_vmem = max(VMEM_STREAM_BUDGET // (2 * bytes_per_group), 1)
    g_cap = max(min(max(max_rows_per_step // SUBLANES, 1), g_cap_vmem), 1)
    g_tile = min(groups, g_cap)
    steps = pl.cdiv(groups, g_tile)

    partials = pl.pallas_call(
        _make_kernel(groups, g_tile, steps),
        out_shape=jax.ShapeDtypeStruct((C, Q, SUBLANES, LANES), jnp.float32),
        grid_spec=pltpu.PrefetchScalarGridSpec(
            num_scalar_prefetch=0,
            grid=(C, steps),
            in_specs=[
                # observed tile: (g_tile, 8, 128), core axis squeezed out
                pl.BlockSpec((None, g_tile, SUBLANES, LANES),
                             lambda c, j: (c, j, 0, 0)),
                # modeled tile: (Q, g_tile, 8, 128), core axis squeezed out
                pl.BlockSpec((Q, None, g_tile, SUBLANES, LANES),
                             lambda c, j: (0, c, j, 0, 0)),
            ],
            # Per-core vreg-aligned (Q, 8, 128) accumulator, resident across j.
            out_specs=pl.BlockSpec((None, Q, SUBLANES, LANES),
                                   lambda c, j: (c, 0, 0, 0)),
        ),
        compiler_params=pltpu.CompilerParams(
            dimension_semantics=("parallel", "arbitrary"),
            vmem_limit_bytes=VMEM_LIMIT_BYTES,
        ),
    )(obs4, mod5)

    # Tiny finalize in the wrapper: collapse core/sublane/lane partials, apply the
    # pinball max with compile-time-constant quantiles, sum over quantiles.
    sums = jnp.sum(partials, axis=(0, 2, 3))             # (Q,) per-quantile nansum
    q_arr = jnp.asarray(quantiles, jnp.float32)
    losses = jnp.maximum(q_arr * sums, (q_arr - 1.0) * sums)
    return jnp.sum(losses)


def _reference_loss(observed, modeled, quantiles=(0.1, 0.5, 0.9)):
    """Pure-JAX reference mirroring the PyTorch forward."""
    obs = jnp.squeeze(observed)
    total = jnp.float32(0.0)
    for i, q in enumerate(quantiles):
        d = obs - modeled[..., i]
        s = jnp.nansum(d)
        total = total + jnp.maximum(q * s, (q - 1.0) * s)
    return total


if __name__ == "__main__":
    key = jax.random.PRNGKey(0)
    Q = 3

    # --- Test 1: tiny shapes matching the module's typical use -------------------
    k_obs, k_mod = jax.random.split(key)
    B, T = 2, 8
    observed = jax.random.normal(k_obs, (B, T, 1), dtype=jnp.float32)  # squeeze -> (B, T)
    modeled = jax.random.normal(k_mod, (B, T, Q), dtype=jnp.float32)
    # NaNs to exercise nansum semantics.
    modeled = modeled.at[0, 3, 1].set(jnp.nan)
    observed = observed.at[1, 5, 0].set(jnp.nan)

    out = jax.block_until_ready(sum_pinball_loss(observed, modeled))
    ref = _reference_loss(observed, modeled)
    assert jnp.allclose(out, ref, rtol=1e-4, atol=1e-4), (out, ref)

    # --- Test 2: multi-step grid + masked tail path (forced single core) ---------
    k_obs2, k_mod2 = jax.random.split(jax.random.PRNGKey(1))
    B2, T2 = 2, 1337                           # N = 2674 -> 3 row-groups, tile 2 -> tail
    observed2 = jax.random.normal(k_obs2, (B2, T2, 1), dtype=jnp.float32)
    modeled2 = jax.random.normal(k_mod2, (B2, T2, Q), dtype=jnp.float32)
    modeled2 = modeled2.at[1, 100, 0].set(jnp.nan)
    modeled2 = modeled2.at[0, 999, 2].set(jnp.nan)
    observed2 = observed2.at[0, 42, 0].set(jnp.nan)

    out2 = jax.block_until_ready(
        sum_pinball_loss(observed2, modeled2, max_rows_per_step=16, core_split=1)
    )
    ref2 = _reference_loss(observed2, modeled2)
    assert jnp.allclose(out2, ref2, rtol=1e-4, atol=1e-4), (out2, ref2)

    # --- Test 3: exercises the 2-way core-split ("parallel") axis + multi-step ---
    out3 = jax.block_until_ready(
        sum_pinball_loss(observed2, modeled2, max_rows_per_step=8, core_split=2)
    )
    assert jnp.allclose(out3, ref2, rtol=1e-4, atol=1e-4), (out3, ref2)

    print("KERNEL_OK")
</pallas_src>

<mosaic_0001>
module attributes {stable_mosaic.version = 11 : i64} {
  func.func @kernel(%arg0: i32, %arg1: i32, %arg2: memref<1x1x8x128xf32, #tpu.memory_space<vmem>>, %arg3: memref<3x1x1x8x128xf32, #tpu.memory_space<vmem>>, %arg4: memref<1x3x8x128xf32, #tpu.memory_space<vmem>>) attributes {dimension_semantics = [#tpu.dimension_semantics<parallel>, #tpu.dimension_semantics<arbitrary>], iteration_bounds = array<i64: 1, 1>, scalar_prefetch = 0 : i64, scratch_operands = 0 : i64, tpu.core_type = #tpu.core_type<tc>, window_params = [{transform_indices = @transform_0, window_bounds = array<i64: 1, 1, 8, 128>}, {transform_indices = @transform_1, window_bounds = array<i64: 3, 1, 1, 8, 128>}, {transform_indices = @transform_2, window_bounds = array<i64: 1, 3, 8, 128>}]} {
    %c0_i32 = arith.constant 0 : i32
    %0 = arith.cmpi eq, %arg1, %c0_i32 : i32
    %1 = arith.extui %0 : i1 to i32
    %c0_i32_0 = arith.constant 0 : i32
    %2 = arith.cmpi ne, %1, %c0_i32_0 : i32
    scf.if %2 {
      %cst_19 = arith.constant 0.000000e+00 : f32
      %21 = vector.broadcast %cst_19 : f32 to vector<3x8x128xf32>
      %c0_20 = arith.constant 0 : index
      %c0_21 = arith.constant 0 : index
      %c0_22 = arith.constant 0 : index
      %c0_23 = arith.constant 0 : index
      %22 = vector.load %arg4[%c0_20, %c0_21, %c0_22, %c0_23] : memref<1x3x8x128xf32, #tpu.memory_space<vmem>>, vector<1x3x8x128xf32>
      %23 = vector.shape_cast %22 : vector<1x3x8x128xf32> to vector<3x8x128xf32>
      %24 = vector.shape_cast %21 : vector<3x8x128xf32> to vector<1x3x8x128xf32>
      tpu.vector_store %arg4[%c0_20, %c0_21, %c0_22, %c0_23], %24 {strides = array<i32>} : memref<1x3x8x128xf32, #tpu.memory_space<vmem>>, vector<1x3x8x128xf32>,
    } else {
    }
    %c0 = arith.constant 0 : index
    %c0_1 = arith.constant 0 : index
    %c0_2 = arith.constant 0 : index
    %c0_3 = arith.constant 0 : index
    %3 = vector.load %arg2[%c0, %c0_1, %c0_2, %c0_3] : memref<1x1x8x128xf32, #tpu.memory_space<vmem>>, vector<1x1x8x128xf32>
    %4 = vector.shape_cast %3 : vector<1x1x8x128xf32> to vector<1x8x128xf32>
    %c0_4 = arith.constant 0 : index
    %c0_5 = arith.constant 0 : index
    %c0_6 = arith.constant 0 : index
    %c0_7 = arith.constant 0 : index
    %c0_8 = arith.constant 0 : index
    %5 = vector.load %arg3[%c0_4, %c0_5, %c0_6, %c0_7, %c0_8] : memref<3x1x1x8x128xf32, #tpu.memory_space<vmem>>, vector<3x1x1x8x128xf32>
    %6 = vector.shape_cast %5 : vector<3x1x1x8x128xf32> to vector<3x1x8x128xf32>
    %7 = vector.shape_cast %4 : vector<1x8x128xf32> to vector<1x1x8x128xf32>
    %8 = vector.broadcast %7 : vector<1x1x8x128xf32> to vector<3x1x8x128xf32>
    %9 = arith.subf %8, %6 : vector<3x1x8x128xf32>
    %10 = arith.cmpf one, %9, %9 : vector<3x1x8x128xf32>
    %cst = arith.constant dense<true> : vector<3x1x8x128xi1>
    %11 = arith.xori %10, %cst : vector<3x1x8x128xi1>
    %cst_9 = arith.constant 0.000000e+00 : f32
    %12 = vector.broadcast %cst_9 : f32 to vector<3x1x8x128xf32>
    %13 = arith.select %11, %9, %12 : vector<3x1x8x128xi1>, vector<3x1x8x128xf32>
    %c0_10 = arith.constant 0 : index
    %c0_11 = arith.constant 0 : index
    %c0_12 = arith.constant 0 : index
    %c0_13 = arith.constant 0 : index
    %14 = vector.load %arg4[%c0_10, %c0_11, %c0_12, %c0_13] : memref<1x3x8x128xf32, #tpu.memory_space<vmem>>, vector<1x3x8x128xf32>
    %15 = vector.shape_cast %14 : vector<1x3x8x128xf32> to vector<3x8x128xf32>
    %cst_14 = arith.constant dense<0.000000e+00> : vector<3x8x128xf32>
    %16 = vector.multi_reduction <add>, %13, %cst_14 [1] : vector<3x1x8x128xf32> to vector<3x8x128xf32>
    %17 = arith.addf %15, %16 : vector<3x8x128xf32>
    %c0_15 = arith.constant 0 : index
    %c0_16 = arith.constant 0 : index
    %c0_17 = arith.constant 0 : index
    %c0_18 = arith.constant 0 : index
    %18 = vector.load %arg4[%c0_15, %c0_16, %c0_17, %c0_18] : memref<1x3x8x128xf32, #tpu.memory_space<vmem>>, vector<1x3x8x128xf32>
    %19 = vector.shape_cast %18 : vector<1x3x8x128xf32> to vector<3x8x128xf32>
    %20 = vector.shape_cast %17 : vector<3x8x128xf32> to vector<1x3x8x128xf32>
    tpu.vector_store %arg4[%c0_15, %c0_16, %c0_17, %c0_18], %20 {strides = array<i32>} : memref<1x3x8x128xf32, #tpu.memory_space<vmem>>, vector<1x3x8x128xf32>,
    return
  }
  func.func @transform_0(%arg0: i32, %arg1: i32) -> (i32, i32, i32, i32) {
    %c0_i32 = arith.constant 0 : i32
    %c0_i32_0 = arith.constant 0 : i32
    %c0_i32_1 = arith.constant 0 : i32
    return %arg0, %arg1, %c0_i32, %c0_i32_0 : i32, i32, i32, i32
  }
  func.func @transform_1(%arg0: i32, %arg1: i32) -> (i32, i32, i32, i32, i32) {
    %c0_i32 = arith.constant 0 : i32
    %c0_i32_0 = arith.constant 0 : i32
    %c0_i32_1 = arith.constant 0 : i32
    %c0_i32_2 = arith.constant 0 : i32
    return %c0_i32, %arg0, %arg1, %c0_i32_0, %c0_i32_1 : i32, i32, i32, i32, i32
  }
  func.func @transform_2(%arg0: i32, %arg1: i32) -> (i32, i32, i32, i32) {
    %c0_i32 = arith.constant 0 : i32
    %c0_i32_0 = arith.constant 0 : i32
    %c0_i32_1 = arith.constant 0 : i32
    %c0_i32_2 = arith.constant 0 : i32
    return %arg0, %c0_i32, %c0_i32_0, %c0_i32_1 : i32, i32, i32, i32
  }
}

</mosaic_0001>

<bundles_post_ra>
// kernel: squeeze.1
= control target key start
LH: loop header
LB: loop body
LE: loop exit
PB: predicated region body
PF: predicated region fallthrough
CT: control target
= control target key end

     0   :  { %vm7_vm0 = vcmask 64512   ;;  %vm13_vm1 = vcmask 130112   ;;  %s39_s0 = inlined_call_operand.vmem [shape: f32[2,8], index: 0, kind: input, shape index: {}]   ;;  %s40_s1 = inlined_call_operand.vmem [shape: f32[16], index: 1, kind: output, shape index: {}]  }
   0x1   :  { %v4_v0 = vld [vmem:[%s39_s0] sm:$0x3]  ;;  %s22_s0 = smov 8  }
   0x2   :  { %5 = vst [vmem:[#allocation1] sm:$0x3] %v4_v0 }
   0x9   :  { %v10_v1 = vld [vmem:[#allocation1 + $0x1] sm:$0x1]   ;;  %v6_v2 = vld [vmem:[#allocation1] sm:$0x1]  }
   0xa   :  { %11 = vrot.lane.b32.xlu0 %v10_v1, %s22_s0  ;;  %8 = vst.msk [vmem:[#allocation0] sm:$0x1] %vm7_vm0, %v6_v2  }
  0x7c   :  { %v12_v3 = vpop.permute.xlu0 %11  }
  0x7d   :  { %14 = vst.msk [vmem:[#allocation0] sm:$0x1] %vm13_vm1, %v12_v3  }
  0x84   :  { %v18_v4 = vld [vmem:[#allocation0] sm:$0x1] }
  0x85   :  { %20 = vst [vmem:[%s40_s1] sm:$0x1] %v18_v4 }

// kernel: sum_pinball_loss.1
= control target key start
LH: loop header
LB: loop body
LE: loop exit
PB: predicated region body
PF: predicated region fallthrough
CT: control target
= control target key end

     0   :  { %vm52_vm2 = vmmov 1   ;;  %s89_s0 = inlined_call_operand.vmem [shape: f32[1,1,8,128], index: 0, kind: input, shape index: {}]   ;;  %s90_s1 = inlined_call_operand.vmem [shape: f32[3,1,1,8,128], index: 1, kind: input, shape index: {}]   ;;  %s91_s2 = inlined_call_operand.vmem [shape: f32[1,3,8,128], index: 2, kind: output, shape index: {}]  }
   0x1   :  { %v18_v0 = vld [vmem:[%s89_s0] sm:$0xff]  ;;  %v20_v2 = vld [vmem:[%s90_s1 + $0x8] sm:$0xff]  ;;  %v21_v5 = vld [vmem:[%s90_s1 + $0x10] sm:$0xff] }
   0x2   :  { %v19_v1 = vld [vmem:[%s90_s1] sm:$0xff]  ;;  %v23_v4 = vsub.f32 %v18_v0, %v20_v2  ;;  %v24_v6 = vsub.f32 %v18_v0, %v21_v5 }
   0x3   :  { %v22_v3 = vsub.f32 %v18_v0, %v19_v1 }
   0x4   :  { %vm26_vm1 = vcmp.ne.f32.partialorder %v23_v4, %v23_v4  ;;  %vm27_vm4 = vcmp.ne.f32.partialorder %v24_v6, %v24_v6 }
   0x5   :  { %vm25_vm0 = vcmp.ne.f32.partialorder %v22_v3, %v22_v3  ;;  %vm29_vm5 = vmxor %vm26_vm1, %vm52_vm2 }
   0x6   :  { %vm28_vm3 = vmxor %vm25_vm0, %vm52_vm2  ;;  %v32_v8 = vsel %vm29_vm5, %v23_v4, 0.0 }
   0x7   :  { %v31_v7 = vsel %vm28_vm3, %v22_v3, 0.0  ;;  %vm30_vm6 = vmxor %vm27_vm4, %vm52_vm2  ;;  %44 = vst [vmem:[%s91_s2 + $0x8] sm:$0xff] %v32_v8 }
   0x8   :  { %v33_v9 = vsel %vm30_vm6, %v24_v6, 0.0  ;;  %43 = vst [vmem:[%s91_s2] sm:$0xff] %v31_v7 }
   0x9   :  { %45 = vst [vmem:[%s91_s2 + $0x10] sm:$0xff] %v33_v9 }

</bundles_post_ra>
